<compile_context>
chip_gen: v5e
topology: v5e:2x2
jax: 0.10.0
libtpu: 0.0.40
codegen_flags: <defaults>
</compile_context>

<pallas_src>
import functools

import jax
import jax.numpy as jnp
from jax.experimental import pallas as pl
from jax.experimental.pallas import tpu as pltpu

# config.* stand-ins (deterministic, synthetic)
INPUT_NET = 20    # forced by s.view(B, 1, 20)
NEURE = 32        # config.neure
OUTPUT_NET = 8    # config.output_net

# Below this batch size, XLA's fused MLP beats the pallas_call launch + pad + slice cost.
MIN_PALLAS_BATCH = 1024


def _round_up(x, m):
    return ((x + m - 1) // m) * m


def dqn_mlp_kernel(xT_ref, w1_ref, b1_ref, w2_ref, b2_ref, w3_ref, b3_ref, oT_ref):
    """Batch-in-lanes fused MLP.

    xT_ref : (INPUT_NET, tb)  f32  activation tile, batch on the lane axis
    wK_ref : (out, in)        f32  PyTorch-layout weights (resident across steps)
    bK_ref : (out, 1)         f32  biases as columns (lane-broadcast)
    oT_ref : (OUTPUT_NET, tb) f32  lane-dense, unmasked store
    """
    xT = xT_ref[...]

    # linear1 + ReLU : W1 @ x + b1
    h1 = jnp.dot(w1_ref[...], xT, preferred_element_type=jnp.float32) + b1_ref[...]
    h1 = jnp.maximum(h1, 0.0)

    # linear2 + ReLU
    h2 = jnp.dot(w2_ref[...], h1, preferred_element_type=jnp.float32) + b2_ref[...]
    h2 = jnp.maximum(h2, 0.0)

    # linear3 (no activation)
    out = jnp.dot(w3_ref[...], h2, preferred_element_type=jnp.float32) + b3_ref[...]
    oT_ref[...] = out.astype(oT_ref.dtype)


def _mlp_reference_2d(x2d, params):
    """Plain XLA forward (PyTorch Linear semantics); also the small-batch fast path."""
    w1, b1, w2, b2, w3, b3 = params
    h1 = jnp.maximum(x2d @ w1.T + b1, 0.0)
    h2 = jnp.maximum(h1 @ w2.T + b2, 0.0)
    return h2 @ w3.T + b3


@functools.partial(jax.jit, static_argnames=("tile_b", "force_pallas"))
def dqn_forward(s, params, tile_b=4096, force_pallas=False):
    """s: (B, INPUT_NET) or anything reshapeable to (B, 1, INPUT_NET).
    Returns act_value of shape (B, 1, OUTPUT_NET), matching the PyTorch module."""
    w1, b1, w2, b2, w3, b3 = params
    B = s.shape[0]
    x2d = s.reshape(B, INPUT_NET).astype(jnp.float32)

    # Small-batch fast path: skip pallas_call entirely.
    if B <= MIN_PALLAS_BATCH and not force_pallas:
        return _mlp_reference_2d(x2d, params).reshape(B, 1, OUTPUT_NET)

    # ---- batch-in-lanes Pallas path ----
    # Batch tile: multiple of 128 lanes, capped so small batches use one grid step.
    tb = _round_up(min(tile_b, _round_up(B, 128)), 128)
    b_pad = _round_up(B, tb)

    # (B, 20) -> (20, b_pad): batch on the lane axis, zero-padded.
    xT = x2d.T
    if b_pad != B:
        xT = jnp.pad(xT, ((0, 0), (0, b_pad - B)))

    # Biases as columns so they lane-broadcast inside the kernel (tiny reshapes).
    b1c = b1.reshape(NEURE, 1)
    b2c = b2.reshape(NEURE, 1)
    b3c = b3.reshape(OUTPUT_NET, 1)

    grid = (b_pad // tb,)

    def const_spec(arr):
        # Full-array block, constant index map -> fetched once, resident across steps.
        return pl.BlockSpec(arr.shape, lambda i: (0, 0))

    outT = pl.pallas_call(
        dqn_mlp_kernel,
        out_shape=jax.ShapeDtypeStruct((OUTPUT_NET, b_pad), jnp.float32),
        grid=grid,
        in_specs=[
            pl.BlockSpec((INPUT_NET, tb), lambda i: (0, i)),   # activation tiles
            const_spec(w1), const_spec(b1c),
            const_spec(w2), const_spec(b2c),
            const_spec(w3), const_spec(b3c),
        ],
        out_specs=pl.BlockSpec((OUTPUT_NET, tb), lambda i: (0, i)),
        compiler_params=pltpu.CompilerParams(
            # v7x: shard batch tiles across both TensorCores; no-op on v5e/v6e.
            dimension_semantics=("parallel",),
            # Explicit scoped-VMEM cap: plenty for tb<=4096 (~2 MiB/step), lifts v5e's
            # 16 MiB default for larger tile sweeps, stays under v7x's 64 MiB physical.
            vmem_limit_bytes=48 * 1024 * 1024,
        ),
    )(xT, w1, b1c, w2, b2c, w3, b3c)

    # Drop batch padding, restore PyTorch output shape (B, 1, OUTPUT_NET).
    return outT[:, :B].T.reshape(B, 1, OUTPUT_NET)


def init_params(key):
    """Deterministic params mimicking the module's init:
    weights ~ N(0, 0.1); biases ~ U(-1/sqrt(fan_in), 1/sqrt(fan_in)) (PyTorch default)."""
    ks = jax.random.split(key, 6)
    w1 = 0.1 * jax.random.normal(ks[0], (NEURE, INPUT_NET), jnp.float32)
    w2 = 0.1 * jax.random.normal(ks[1], (NEURE, NEURE), jnp.float32)
    w3 = 0.1 * jax.random.normal(ks[2], (OUTPUT_NET, NEURE), jnp.float32)
    b1 = jax.random.uniform(ks[3], (NEURE,), jnp.float32,
                            -1.0 / jnp.sqrt(INPUT_NET), 1.0 / jnp.sqrt(INPUT_NET))
    b2 = jax.random.uniform(ks[4], (NEURE,), jnp.float32,
                            -1.0 / jnp.sqrt(NEURE), 1.0 / jnp.sqrt(NEURE))
    b3 = jax.random.uniform(ks[5], (OUTPUT_NET,), jnp.float32,
                            -1.0 / jnp.sqrt(NEURE), 1.0 / jnp.sqrt(NEURE))
    return (w1, b1, w2, b2, w3, b3)


def dqn_reference(s, params):
    """Pure-JAX reference matching the PyTorch forward."""
    x2d = s.reshape(s.shape[0], INPUT_NET).astype(jnp.float32)
    return _mlp_reference_2d(x2d, params).reshape(s.shape[0], 1, OUTPUT_NET)


if __name__ == "__main__":
    key = jax.random.PRNGKey(0)
    pkey, xkey, xkey2 = jax.random.split(key, 3)
    params = init_params(pkey)

    # Small inference-style batch; force the Pallas path so the kernel is exercised.
    B = 2
    x = jax.random.normal(xkey, (B, INPUT_NET), jnp.float32)
    act_value = dqn_forward(x, params, force_pallas=True)
    jax.block_until_ready(act_value)
    assert act_value.shape == (B, 1, OUTPUT_NET)
    assert act_value.dtype == jnp.float32
    ref = dqn_reference(x, params)
    assert jnp.allclose(act_value, ref, atol=1e-5, rtol=1e-5)

    # Multi-tile + padding check: 3 grid steps of 128 lanes, batch padded 300 -> 384.
    B2 = 300
    x2 = jax.random.normal(xkey2, (B2, INPUT_NET), jnp.float32)
    act2 = dqn_forward(x2, params, tile_b=128, force_pallas=True)
    jax.block_until_ready(act2)
    assert act2.shape == (B2, 1, OUTPUT_NET)
    assert jnp.allclose(act2, dqn_reference(x2, params), atol=1e-5, rtol=1e-5)

    # Small-batch fast path (no pallas_call) must agree too.
    fast = dqn_forward(x, params)
    jax.block_until_ready(fast)
    assert jnp.allclose(fast, ref, atol=1e-6, rtol=1e-6)

    print("KERNEL_OK")
</pallas_src>

<mosaic_0001>
module attributes {stable_mosaic.version = 11 : i64} {
  func.func @dqn_mlp_kernel(%arg0: i32, %arg1: memref<20x128xf32, #tpu.memory_space<vmem>>, %arg2: memref<32x20xf32, #tpu.memory_space<vmem>>, %arg3: memref<32x1xf32, #tpu.memory_space<vmem>>, %arg4: memref<32x32xf32, #tpu.memory_space<vmem>>, %arg5: memref<32x1xf32, #tpu.memory_space<vmem>>, %arg6: memref<8x32xf32, #tpu.memory_space<vmem>>, %arg7: memref<8x1xf32, #tpu.memory_space<vmem>>, %arg8: memref<8x128xf32, #tpu.memory_space<vmem>>) attributes {dimension_semantics = [#tpu.dimension_semantics<parallel>], iteration_bounds = array<i64: 1>, scalar_prefetch = 0 : i64, scratch_operands = 0 : i64, tpu.core_type = #tpu.core_type<tc>, window_params = [{transform_indices = @transform_0, window_bounds = array<i64: 20, 128>}, {pipeline_mode = #tpu.pipeline_mode<synchronous>, transform_indices = @transform_1, window_bounds = array<i64: 32, 20>}, {pipeline_mode = #tpu.pipeline_mode<synchronous>, transform_indices = @transform_2, window_bounds = array<i64: 32, 1>}, {pipeline_mode = #tpu.pipeline_mode<synchronous>, transform_indices = @transform_3, window_bounds = array<i64: 32, 32>}, {pipeline_mode = #tpu.pipeline_mode<synchronous>, transform_indices = @transform_4, window_bounds = array<i64: 32, 1>}, {pipeline_mode = #tpu.pipeline_mode<synchronous>, transform_indices = @transform_5, window_bounds = array<i64: 8, 32>}, {pipeline_mode = #tpu.pipeline_mode<synchronous>, transform_indices = @transform_6, window_bounds = array<i64: 8, 1>}, {transform_indices = @transform_7, window_bounds = array<i64: 8, 128>}]} {
    %c0 = arith.constant 0 : index
    %c0_0 = arith.constant 0 : index
    %0 = vector.load %arg1[%c0, %c0_0] : memref<20x128xf32, #tpu.memory_space<vmem>>, vector<20x128xf32>
    %c0_1 = arith.constant 0 : index
    %c0_2 = arith.constant 0 : index
    %1 = vector.load %arg2[%c0_1, %c0_2] : memref<32x20xf32, #tpu.memory_space<vmem>>, vector<32x20xf32>
    %cst = arith.constant dense<0.000000e+00> : vector<32x128xf32>
    %2 = tpu.matmul %1, %0, %cst {dimension_numbers = #tpu.dot_dimension_numbers<[1], [0], [0], [1], [0, 0, 1, 1], [], []>} : vector<32x20xf32>, vector<20x128xf32>, vector<32x128xf32> -> vector<32x128xf32>
    %c0_3 = arith.constant 0 : index
    %c0_4 = arith.constant 0 : index
    %3 = vector.load %arg3[%c0_3, %c0_4] : memref<32x1xf32, #tpu.memory_space<vmem>>, vector<32x1xf32>
    %4 = vector.broadcast %3 : vector<32x1xf32> to vector<32x128xf32>
    %5 = arith.addf %2, %4 : vector<32x128xf32>
    %cst_5 = arith.constant 0.000000e+00 : f32
    %6 = vector.broadcast %cst_5 : f32 to vector<32x128xf32>
    %7 = arith.maximumf %5, %6 : vector<32x128xf32>
    %c0_6 = arith.constant 0 : index
    %c0_7 = arith.constant 0 : index
    %8 = vector.load %arg4[%c0_6, %c0_7] : memref<32x32xf32, #tpu.memory_space<vmem>>, vector<32x32xf32>
    %cst_8 = arith.constant dense<0.000000e+00> : vector<32x128xf32>
    %9 = tpu.matmul %8, %7, %cst_8 {dimension_numbers = #tpu.dot_dimension_numbers<[1], [0], [0], [1], [0, 0, 1, 1], [], []>} : vector<32x32xf32>, vector<32x128xf32>, vector<32x128xf32> -> vector<32x128xf32>
    %c0_9 = arith.constant 0 : index
    %c0_10 = arith.constant 0 : index
    %10 = vector.load %arg5[%c0_9, %c0_10] : memref<32x1xf32, #tpu.memory_space<vmem>>, vector<32x1xf32>
    %11 = vector.broadcast %10 : vector<32x1xf32> to vector<32x128xf32>
    %12 = arith.addf %9, %11 : vector<32x128xf32>
    %cst_11 = arith.constant 0.000000e+00 : f32
    %13 = vector.broadcast %cst_11 : f32 to vector<32x128xf32>
    %14 = arith.maximumf %12, %13 : vector<32x128xf32>
    %c0_12 = arith.constant 0 : index
    %c0_13 = arith.constant 0 : index
    %15 = vector.load %arg6[%c0_12, %c0_13] : memref<8x32xf32, #tpu.memory_space<vmem>>, vector<8x32xf32>
    %cst_14 = arith.constant dense<0.000000e+00> : vector<8x128xf32>
    %16 = tpu.matmul %15, %14, %cst_14 {dimension_numbers = #tpu.dot_dimension_numbers<[1], [0], [0], [1], [0, 0, 1, 1], [], []>} : vector<8x32xf32>, vector<32x128xf32>, vector<8x128xf32> -> vector<8x128xf32>
    %c0_15 = arith.constant 0 : index
    %c0_16 = arith.constant 0 : index
    %17 = vector.load %arg7[%c0_15, %c0_16] : memref<8x1xf32, #tpu.memory_space<vmem>>, vector<8x1xf32>
    %18 = vector.broadcast %17 : vector<8x1xf32> to vector<8x128xf32>
    %19 = arith.addf %16, %18 : vector<8x128xf32>
    %c0_17 = arith.constant 0 : index
    %c0_18 = arith.constant 0 : index
    %20 = vector.load %arg8[%c0_17, %c0_18] : memref<8x128xf32, #tpu.memory_space<vmem>>, vector<8x128xf32>
    tpu.vector_store %arg8[%c0_17, %c0_18], %19 {strides = array<i32>} : memref<8x128xf32, #tpu.memory_space<vmem>>, vector<8x128xf32>,
    return
  }
  func.func @transform_0(%arg0: i32) -> (i32, i32) {
    %c0_i32 = arith.constant 0 : i32
    %c0_i32_0 = arith.constant 0 : i32
    return %c0_i32, %arg0 : i32, i32
  }
  func.func @transform_1(%arg0: i32) -> (i32, i32) {
    %c0_i32 = arith.constant 0 : i32
    %c0_i32_0 = arith.constant 0 : i32
    %c0_i32_1 = arith.constant 0 : i32
    return %c0_i32, %c0_i32_0 : i32, i32
  }
  func.func @transform_2(%arg0: i32) -> (i32, i32) {
    %c0_i32 = arith.constant 0 : i32
    %c0_i32_0 = arith.constant 0 : i32
    %c0_i32_1 = arith.constant 0 : i32
    return %c0_i32, %c0_i32_0 : i32, i32
  }
  func.func @transform_3(%arg0: i32) -> (i32, i32) {
    %c0_i32 = arith.constant 0 : i32
    %c0_i32_0 = arith.constant 0 : i32
    %c0_i32_1 = arith.constant 0 : i32
    return %c0_i32, %c0_i32_0 : i32, i32
  }
  func.func @transform_4(%arg0: i32) -> (i32, i32) {
    %c0_i32 = arith.constant 0 : i32
    %c0_i32_0 = arith.constant 0 : i32
    %c0_i32_1 = arith.constant 0 : i32
    return %c0_i32, %c0_i32_0 : i32, i32
  }
  func.func @transform_5(%arg0: i32) -> (i32, i32) {
    %c0_i32 = arith.constant 0 : i32
    %c0_i32_0 = arith.constant 0 : i32
    %c0_i32_1 = arith.constant 0 : i32
    return %c0_i32, %c0_i32_0 : i32, i32
  }
  func.func @transform_6(%arg0: i32) -> (i32, i32) {
    %c0_i32 = arith.constant 0 : i32
    %c0_i32_0 = arith.constant 0 : i32
    %c0_i32_1 = arith.constant 0 : i32
    return %c0_i32, %c0_i32_0 : i32, i32
  }
  func.func @transform_7(%arg0: i32) -> (i32, i32) {
    %c0_i32 = arith.constant 0 : i32
    %c0_i32_0 = arith.constant 0 : i32
    return %c0_i32, %arg0 : i32, i32
  }
}

</mosaic_0001>

<bundles_post_ra>
// kernel: dqn_forward.1
= control target key start
LH: loop header
LB: loop body
LE: loop exit
PB: predicated region body
PF: predicated region fallthrough
CT: control target
= control target key end

     0   :  { %vm70_vm0 = vcmask 1043456   ;;  %v237_v2 = vmov 0   ;;  %vm57_vm1 = vcmask 162816   ;;  %vm135_vm2 = vcmask 261120   ;;  %s353_s0 = inlined_call_operand.vmem [shape: f32[20,128], index: 0, kind: input, shape index: {}]   ;;  %s354_s2 = inlined_call_operand.vmem [shape: f32[32,1], index: 2, kind: input, shape index: {}]   ;;  %s355_s1 = inlined_call_operand.vmem [shape: f32[32,20], index: 1, kind: input, shape index: {}]   ;;  %s356_s4 = inlined_call_operand.vmem [shape: f32[32,1], index: 4, kind: input, shape index: {}]   ;;  %s357_s3 = inlined_call_operand.vmem [shape: f32[32,32], index: 3, kind: input, shape index: {}]   ;;  %s358_s6 = inlined_call_operand.vmem [shape: f32[8,1], index: 6, kind: input, shape index: {}]   ;;  %s359_s5 = inlined_call_operand.vmem [shape: f32[8,32], index: 5, kind: input, shape index: {}]   ;;  %s360_s7 = inlined_call_operand.vmem [shape: f32[8,128], index: 7, kind: output, shape index: {}]  }
   0x1   :  { %v28_v0 = vld [vmem:[%s353_s0 + $0x10] sm:$0xf]  ;;  %v27_v1 = vld [vmem:[%s353_s0 + $0x8] sm:$0xff]  ;;  %235 = vset.pattern.permute.xlu1 %v237_v2  ;;  %234 = vset.pattern.permute.xlu0 %v237_v2  ;;  %v36_v3 = vld [vmem:[%s354_s2 + $0x18] sm:$0xff] }
   0x2   :  { %216 = vmatpush.msk.msra.mxu0 %vm70_vm0, %v28_v0  ;;  %v34_v4 = vld [vmem:[%s354_s2 + $0x8] sm:$0xff]  ;;  %226 = vmatpush.msk.msra.mxu1 %vm70_vm0, %v28_v0  ;;  %v26_v5 = vld [vmem:[%s353_s0] sm:$0xff]  ;;  %v32_v7 = vld [vmem:[%s355_s1 + $0x18] sm:$0xff] }
   0x3   :  { %54 = vperm.xlu0 %234, %v36_v3   ;;  %44 = vperm.xlu1 %235, %v34_v4   ;;  %v29_v6 = vld [vmem:[%s355_s1] sm:$0xff]  ;;  %v35_v8 = vld [vmem:[%s354_s2 + $0x10] sm:$0xff]  ;;  %v30_v10 = vld [vmem:[%s355_s1 + $0x8] sm:$0xff] }
   0x4   :  { %88 = vmatpush.msra.mxu0 %v27_v1  ;;  %227 = vmatpush.msra.mxu1 %v27_v1  ;;  %v33_v9 = vld [vmem:[%s354_s2] sm:$0xff]  ;;  %v112_v11 = vld [vmem:[%s356_s4 + $0x8] sm:$0xff]  ;;  %v31_v13 = vld [vmem:[%s355_s1 + $0x10] sm:$0xff] }
   0x5   :  { %236 = vset.pattern.permute.xlu2 %v237_v2  ;;  %v111_v12 = vld [vmem:[%s356_s4] sm:$0xff]  ;;  %v114_v21 = vld [vmem:[%s356_s4 + $0x18] sm:$0xff]  ;;  %v113_v25 = vld [vmem:[%s356_s4 + $0x10] sm:$0xff] }
   0x6   :  { %89 = vmatpush.msra.mxu0 %v26_v5  ;;  %228 = vmatpush.msra.mxu1 %v26_v5  ;;  %v107_v32 = vld [vmem:[%s357_s3] sm:$0xff]  ;;  %v108_v33 = vld [vmem:[%s357_s3 + $0x8] sm:$0xff]  ;;  %v109_v35 = vld [vmem:[%s357_s3 + $0x10] sm:$0xff] }
   0x7   :  { %217 = vmatmul.msk.f32.vlgmr.msra.gmra.mxu0 %vm57_vm1, %v29_v6  ;;  %220 = vmatmul.msk.f32.vlgmr.msra.gmra.mxu1 %vm57_vm1, %v32_v7  ;;  %v182_v34 = vld [vmem:[%s358_s6] sm:$0xff]  ;;  %v110_v36 = vld [vmem:[%s357_s3 + $0x18] sm:$0xff] }
   0x8   :  { %132 = vperm.xlu2 %236, %v114_v21   ;;  %v181_v53 = vld [vmem:[%s359_s5] sm:$0xff] }
   0xb   :  { %49 = vperm.xlu0 %234, %v35_v8   ;;  %39 = vperm.xlu1 %235, %v33_v9  }
   0xf   :  { %218 = vmatmul.msk.f32.gmra.mxu0 %vm57_vm1, %v30_v10 }
  0x10   :  { %127 = vperm.xlu2 %236, %v113_v25  }
  0x13   :  { %122 = vperm.xlu0 %234, %v112_v11   ;;  %117 = vperm.xlu1 %235, %v111_v12  }
  0x17   :  { %219 = vmatmul.msk.f32.gmra.mxu0 %vm57_vm1, %v31_v13 }
  0x18   :  { %185 = vperm.xlu2 %236, %v182_v34  }
  0x62   :  { %v133_v38 = vpop.permute.xlu2 %132 }
  0x6a   :  { %v128_v40 = vpop.permute.xlu2 %127 }
  0x72   :  { %v186_v54 = vpop.permute.xlu2 %185 }
  0x75   :  { %v55_v14 = vpop.permute.xlu0 %54  ;;  %v45_v19 = vpop.permute.xlu1 %44 }
  0x7d   :  { %v50_v22 = vpop.permute.xlu0 %49  ;;  %v40_v23 = vpop.permute.xlu1 %39 }
  0x84   :  { %v91_v15 = vpop.f32.mrf.mxu0  ;;  %v100_v16 = vpop.f32.mrf.mxu1 }
  0x85   :  { %v101_v17 = vadd.f32 %v100_v16, %v55_v14  ;;  %v92_v28 = vadd.f32 %v91_v15, %v40_v23  ;;  %v123_v44 = vpop.permute.xlu0 %122  ;;  %v118_v48 = vpop.permute.xlu1 %117 }
  0x87   :  { %v106_v18 = vmax.f32 %v101_v17, 0.0  ;;  %v103_v31 = vmax.f32 %v92_v28, 0.0 }
  0x89   :  { %160 = vmatpush.msrb.mxu1 %v106_v18  ;;  %229 = vmatpush.msra.mxu3 %v106_v18 }
  0x8c   :  { %v94_v20 = vpop.f32.mrf.mxu0 }
  0x8d   :  { %v95_v26 = vadd.f32 %v94_v20, %v45_v19 }
  0x8f   :  { %v104_v30 = vmax.f32 %v95_v26, 0.0 }
  0x94   :  { %v97_v24 = vpop.f32.mrf.mxu0 }
  0x95   :  { %v98_v27 = vadd.f32 %v97_v24, %v50_v22 }
  0x97   :  { %v105_v29 = vmax.f32 %v98_v27, 0.0 }
  0x99   :  { %161 = vmatpush.msrb.mxu1 %v105_v29  ;;  %230 = vmatpush.msra.mxu3 %v105_v29 }
  0x9b   :  { %162 = vmatpush.msrb.mxu1 %v104_v30  ;;  %231 = vmatpush.msra.mxu3 %v104_v30 }
  0x9d   :  { %163 = vmatpush.msrb.mxu1 %v103_v31  ;;  %232 = vmatpush.msra.mxu3 %v103_v31 }
  0x9e   :  { %221 = vmatmul.msk.f32.vlgmr.msrb.gmra.mxu1 %vm135_vm2, %v107_v32  ;;  %222 = vmatmul.msk.f32.vlgmr.msra.gmra.mxu3 %vm135_vm2, %v108_v33 }
  0xa6   :  { %223 = vmatmul.msk.f32.gmra.mxu3 %vm135_vm2, %v109_v35 }
  0xae   :  { %224 = vmatmul.msk.f32.gmra.mxu3 %vm135_vm2, %v110_v36 }
 0x11b   :  { %v165_v45 = vpop.f32.mrf.mxu1 }
 0x11c   :  { %v166_v49 = vadd.f32 %v165_v45, %v118_v48 }
 0x11e   :  { %v177_v52 = vmax.f32 %v166_v49, 0.0 }
 0x121   :  { %v168_v37 = vpop.f32.mrf.mxu3 }
 0x122   :  { %v169_v46 = vadd.f32 %v168_v37, %v123_v44 }
 0x124   :  { %v178_v51 = vmax.f32 %v169_v46, 0.0 }
 0x129   :  { %v171_v39 = vpop.f32.mrf.mxu3 }
 0x12a   :  { %v172_v42 = vadd.f32 %v171_v39, %v128_v40 }
 0x12c   :  { %v179_v50 = vmax.f32 %v172_v42, 0.0 }
 0x131   :  { %v174_v41 = vpop.f32.mrf.mxu3 }
 0x132   :  { %v175_v43 = vadd.f32 %v174_v41, %v133_v38 }
 0x134   :  { %v180_v47 = vmax.f32 %v175_v43, 0.0 }
 0x136   :  { %203 = vmatpush.msra.mxu2 %v180_v47 }
 0x138   :  { %204 = vmatpush.msra.mxu2 %v179_v50 }
 0x13a   :  { %205 = vmatpush.msra.mxu2 %v178_v51 }
 0x13c   :  { %206 = vmatpush.msra.mxu2 %v177_v52 }
 0x13d   :  { %225 = vmatmul.msk.f32.vlgmr.msra.gmra.mxu2 %vm135_vm2, %v181_v53 }
 0x1c0   :  { %v208_v55 = vpop.f32.mrf.mxu2 }
 0x1c1   :  { %v209_v56 = vadd.f32 %v208_v55, %v186_v54 }
 0x1c3   :  { %211 = vst [vmem:[%s360_s7] sm:$0xff] %v209_v56 }

</bundles_post_ra>
